<compile_context>
chip_gen: v7x
topology: tpu7x:2x2x1
jax: 0.10.0
libtpu: 0.0.40
codegen_flags: <defaults>
</compile_context>

<pallas_src>
import functools

import jax
import jax.numpy as jnp
from jax.experimental import pallas as pl
from jax.experimental.pallas import tpu as pltpu


# --------------------------------------------------------------------------- #
# Kernel
# --------------------------------------------------------------------------- #
def _ensemble_kernel(x_ref, w_ref, scale_ref, bias_ref, o_ref,
                     m_ref, s_ref, lse_ref, *, inv_n):
    # grid = (model_splits [parallel], B_tiles [parallel],
    #         models_per_split [arbitrary], V_tiles [arbitrary])
    n = pl.program_id(2)
    j = pl.program_id(3)
    n_per_split = pl.num_programs(2)
    n_vtiles = pl.num_programs(3)
    tv = w_ref.shape[2]

    # Reset the running logsumexp state at the start of each model's vocab sweep.
    @pl.when(j == 0)
    def _():
        m_ref[...] = jnp.full_like(m_ref, -jnp.inf)
        s_ref[...] = jnp.zeros_like(s_ref)

    # Reset this split's Σ lse at the very first step of the (split, batch-tile) block.
    @pl.when((n == 0) & (j == 0))
    def _():
        lse_ref[...] = jnp.zeros_like(lse_ref)

    col = pl.multiple_of(j * tv, tv)

    x = x_ref[0]                                 # (TB, H)  bf16
    w = w_ref[0].astype(jnp.bfloat16)            # (H, TV)  int8/bf16 -> bf16 (dequant upcast)
    scale = scale_ref[:, pl.ds(col, tv)]         # (1, TV)  f32 per-column dequant scale
    bias = bias_ref[:, pl.ds(col, tv)]           # (1, TV)  f32

    # Linear: MXU bf16 matmul, f32 accumulation; dequant scale folded in afterwards.
    logits = jnp.dot(x, w, preferred_element_type=jnp.float32) * scale + bias

    # Online logsumexp over the vocab axis for this model.
    tile_max = jnp.max(logits, axis=-1, keepdims=True)          # (TB, 1)
    m_new = jnp.maximum(m_ref[...], tile_max)
    s_ref[...] = s_ref[...] * jnp.exp(m_ref[...] - m_new) + \
                 jnp.sum(jnp.exp(logits - m_new), axis=-1, keepdims=True)
    m_ref[...] = m_new

    # Accumulate Σ_n logits tile-wise, directly in the resident output block.
    @pl.when(n == 0)
    def _():
        o_ref[:, pl.ds(col, tv)] = logits

    @pl.when(n > 0)
    def _():
        o_ref[:, pl.ds(col, tv)] += logits

    # End of this model's vocab sweep: fold its logsumexp into the split's Σ lse.
    @pl.when(j == n_vtiles - 1)
    def _():
        lse_ref[...] += m_ref[...] + jnp.log(s_ref[...])

    # Final step for this (split, batch-tile): partial = (Σ logits − Σ lse) / N_total.
    @pl.when((n == n_per_split - 1) & (j == n_vtiles - 1))
    def _():
        o_ref[...] = ((o_ref[...] - lse_ref[...]) * inv_n).astype(o_ref.dtype)


# --------------------------------------------------------------------------- #
# Tiling helpers
# --------------------------------------------------------------------------- #
def _tpu_vmem_info():
    """Returns (per-core VMEM bytes, looks_like_v7x). Conservative fallback on failure."""
    try:
        info = pltpu.get_tpu_info()
        cap = int(info.vmem_capacity_bytes)
        ver = str(getattr(info, "chip_version", ""))
        return cap, ("7" in ver) or (cap <= (96 << 20))   # v7x is the 64 MiB/TC gen
    except Exception:
        return 64 << 20, False


def _pick_vocab_tile(v, target):
    """Largest multiple of 128 that divides V and is <= target (else the full V)."""
    if v <= target or v % 128 != 0:
        return v
    t = (min(target, v) // 128) * 128
    while t >= 128:
        if v % t == 0:
            return t
        t -= 128
    return v


def _largest_batch_tile(b, cap):
    """Largest divisor of B that is <= cap and a multiple of 8 (else B itself)."""
    if b <= cap:
        return b
    t = (cap // 8) * 8
    while t >= 8:
        if b % t == 0:
            return t
        t -= 8
    return b


# --------------------------------------------------------------------------- #
# Wrapper
# --------------------------------------------------------------------------- #
@functools.partial(jax.jit,
                   static_argnames=("tv", "tb", "model_splits", "weight_buffers"))
def ensemble_generator(hidden, weights_t, scales, biases, *,
                       tv=None, tb=None, model_splits=None, weight_buffers=2):
    """hidden: (N,B,H) bf16; weights_t: (N,H,V) int8/bf16; scales,biases: (N,1,V) f32.
    Returns the averaged log-probability distribution, shape (B, V) f32."""
    N, B, H = hidden.shape
    _, _, V = weights_t.shape
    assert weights_t.shape == (N, H, V)
    assert scales.shape == (N, 1, V) and biases.shape == (N, 1, V)

    vmem_cap, is_v7x = _tpu_vmem_info()
    budget = max(vmem_cap - (16 << 20), 16 << 20)        # headroom for compiler scratch

    w_isz = jnp.dtype(weights_t.dtype).itemsize
    x_isz = jnp.dtype(hidden.dtype).itemsize

    # Vocab tile: larger on v7x (fast HBM -> fixed ~0.35us per-step overhead matters).
    if tv is None:
        targets = (4096, 2048, 1024, 512, 256, 128) if is_v7x else (2048, 1024, 512, 256, 128)
        tv = V
        for tgt in targets:
            tv = _pick_vocab_tile(V, tgt)
            if weight_buffers * H * tv * w_isz <= budget // 3:
                break
    assert V % tv == 0 and (tv % 128 == 0 or tv == V)

    # VMEM accounting (output counted double-buffered, per review).
    fixed = weight_buffers * H * tv * w_isz              # streamed weight buffers
    fixed += 2 * 2 * V * 4                               # hoisted scale + bias blocks (x2 buf)
    per_row = 2 * H * x_isz                              # hidden double-buffer
    per_row += 2 * V * 4                                 # resident f32 output block (x2 buf)
    per_row += 3 * 128 * 4                               # (tb,1) f32 scratch, lane-padded

    # Batch tile: keep tb = B (one batch tile) whenever the resident output fits —
    # every extra batch tile re-streams ALL N*H*V weight bytes (1/n_btiles throughput).
    if tb is None:
        tb_cap = max((budget - fixed) // per_row, 8)
        tb = _largest_batch_tile(B, tb_cap)
    assert B % tb == 0 and (tb == B or tb % 8 == 0)

    # Model-axis split across TensorCores (v7x megacore): disjoint weight streams per
    # core, tiny XLA combine of the per-split partials. Harmless on single-TC chips.
    if model_splits is None:
        model_splits = 2 if (N % 2 == 0 and N >= 2) else 1
    assert N % model_splits == 0
    npc = N // model_splits

    n_vtiles = V // tv
    n_btiles = B // tb

    est = fixed + tb * per_row
    vmem_limit = int(min(max(est + (8 << 20), 32 << 20), budget))

    w_spec_kwargs = {}
    if weight_buffers != 2:                               # optional deeper weight pipeline
        w_spec_kwargs["pipeline_mode"] = pl.Buffered(weight_buffers)

    kernel = functools.partial(_ensemble_kernel, inv_n=1.0 / N)

    partials = pl.pallas_call(
        kernel,
        out_shape=jax.ShapeDtypeStruct((model_splits, B, V), jnp.float32),
        grid_spec=pltpu.PrefetchScalarGridSpec(
            num_scalar_prefetch=0,
            grid=(model_splits, n_btiles, npc, n_vtiles),
            in_specs=[
                # hidden (N,B,H)
                pl.BlockSpec((1, tb, H), lambda s, b, n, j: (s * npc + n, b, 0)),
                # weights (N,H,V), streamed in vocab tiles
                pl.BlockSpec((1, H, tv), lambda s, b, n, j: (s * npc + n, 0, j),
                             **w_spec_kwargs),
                # dequant scales (N,1,V): one full-V block per model (hoisted DMA)
                pl.BlockSpec((None, 1, V), lambda s, b, n, j: (s * npc + n, 0, 0)),
                # biases (N,1,V): one full-V block per model (hoisted DMA)
                pl.BlockSpec((None, 1, V), lambda s, b, n, j: (s * npc + n, 0, 0)),
            ],
            # resident per-(split, batch-tile) accumulator slab
            out_specs=pl.BlockSpec((None, tb, V), lambda s, b, n, j: (s, b, 0)),
            scratch_shapes=[
                pltpu.VMEM((tb, 1), jnp.float32),   # running max (online lse)
                pltpu.VMEM((tb, 1), jnp.float32),   # running sum (online lse)
                pltpu.VMEM((tb, 1), jnp.float32),   # Σ lse over this split's models
            ],
        ),
        compiler_params=pltpu.CompilerParams(
            dimension_semantics=("parallel", "parallel", "arbitrary", "arbitrary"),
            vmem_limit_bytes=vmem_limit,
        ),
    )(hidden, weights_t, scales, biases)

    return partials[0] if model_splits == 1 else jnp.sum(partials, axis=0)


# --------------------------------------------------------------------------- #
# Host-side one-time parameter prep
# --------------------------------------------------------------------------- #
def prepare_ensemble_params(hidden, weights_vh, biases, weight_format="int8"):
    """hidden: (N,B,H) -> bf16; weights_vh: (N,V,H) PyTorch Linear weights -> (N,H,V)
    int8 (symmetric per-(model, vocab-column) scales) or bf16; biases -> (N,1,V) f32."""
    N, V, _ = weights_vh.shape
    x = hidden.astype(jnp.bfloat16)
    w_t = jnp.transpose(weights_vh, (0, 2, 1)).astype(jnp.float32)   # (N, H, V)
    b = jnp.reshape(biases, (N, 1, V)).astype(jnp.float32)
    if weight_format == "int8":
        amax = jnp.max(jnp.abs(w_t), axis=1, keepdims=True)          # (N, 1, V)
        scale = jnp.maximum(amax, 1e-8) / 127.0
        w_q = jnp.clip(jnp.round(w_t / scale), -127.0, 127.0).astype(jnp.int8)
        return x, w_q, scale.astype(jnp.float32), b
    elif weight_format == "bf16":
        scale = jnp.ones((N, 1, V), jnp.float32)
        return x, w_t.astype(jnp.bfloat16), scale, b
    raise ValueError(f"unknown weight_format: {weight_format}")


# --------------------------------------------------------------------------- #
# Pure-JAX reference
# --------------------------------------------------------------------------- #
def _ensemble_reference(hidden, weights_t_f32, biases):
    logits = jnp.einsum("nbh,nhv->nbv", hidden.astype(jnp.float32),
                        weights_t_f32.astype(jnp.float32),
                        precision=jax.lax.Precision.HIGHEST) + biases
    return jnp.mean(jax.nn.log_softmax(logits, axis=-1), axis=0)


if __name__ == "__main__":
    # Small deterministic shapes (decode-like): 2 ensemble members, batch 8, H=128, V=512.
    N_MODELS, B, H, V = 2, 8, 128, 512

    key = jax.random.PRNGKey(0)
    k_x, k_w, k_b = jax.random.split(key, 3)
    hidden_f32 = jax.random.normal(k_x, (N_MODELS, B, H), dtype=jnp.float32)
    weights_vh = jax.random.normal(k_w, (N_MODELS, V, H), dtype=jnp.float32) * 0.05
    biases = jax.random.normal(k_b, (N_MODELS, 1, V), dtype=jnp.float32) * 0.01

    # --- bf16 weight path: tight check against a matched-precision reference ---
    x, w16, s16, b32 = prepare_ensemble_params(hidden_f32, weights_vh, biases, "bf16")
    out16 = jax.block_until_ready(ensemble_generator(x, w16, s16, b32, tv=256))
    ref16 = _ensemble_reference(x, w16, b32)
    assert out16.shape == (B, V)
    assert jnp.allclose(out16, ref16, atol=2e-3, rtol=2e-3), "bf16 path mismatch"

    # --- int8 weight path (default): tight vs dequantised ref, loose vs full f32 truth ---
    x, w8, s8, b32 = prepare_ensemble_params(hidden_f32, weights_vh, biases, "int8")
    out8 = jax.block_until_ready(ensemble_generator(x, w8, s8, b32, tv=256))
    w_deq = w8.astype(jnp.float32) * s8
    ref8 = _ensemble_reference(x, w_deq, b32)
    ref_full = _ensemble_reference(hidden_f32, jnp.transpose(weights_vh, (0, 2, 1)), b32)
    assert jnp.allclose(out8, ref8, atol=2e-3, rtol=2e-3), "int8 path mismatch vs dequant ref"
    assert jnp.allclose(out8, ref_full, atol=5e-2), "int8 quantisation error too large"

    # --- also exercise the single-split (no megacore model split) code path ---
    out1 = jax.block_until_ready(
        ensemble_generator(x, w8, s8, b32, tv=256, model_splits=1))
    assert jnp.allclose(out1, out8, atol=1e-4, rtol=1e-4), "split/no-split mismatch"

    print("KERNEL_OK")
</pallas_src>

<mosaic_0001>
module attributes {stable_mosaic.version = 11 : i64} {
  func.func @_ensemble_kernel(%arg0: i32, %arg1: i32, %arg2: i32, %arg3: i32, %arg4: memref<1x8x128xbf16, #tpu.memory_space<vmem>>, %arg5: memref<1x128x256xbf16, #tpu.memory_space<vmem>>, %arg6: memref<1x1x512xf32, #tpu.memory_space<vmem>>, %arg7: memref<1x1x512xf32, #tpu.memory_space<vmem>>, %arg8: memref<1x8x512xf32, #tpu.memory_space<vmem>>, %arg9: memref<8x1xf32, #tpu.memory_space<vmem>>, %arg10: memref<8x1xf32, #tpu.memory_space<vmem>>, %arg11: memref<8x1xf32, #tpu.memory_space<vmem>>) attributes {dimension_semantics = [#tpu.dimension_semantics<parallel>, #tpu.dimension_semantics<parallel>, #tpu.dimension_semantics<arbitrary>, #tpu.dimension_semantics<arbitrary>], iteration_bounds = array<i64: 2, 1, 1, 2>, scalar_prefetch = 0 : i64, scratch_operands = 3 : i64, tpu.core_type = #tpu.core_type<tc>, window_params = [{transform_indices = @transform_0, window_bounds = array<i64: 1, 8, 128>}, {transform_indices = @transform_1, window_bounds = array<i64: 1, 128, 256>}, {transform_indices = @transform_2, window_bounds = array<i64: 1, 1, 512>}, {transform_indices = @transform_3, window_bounds = array<i64: 1, 1, 512>}, {transform_indices = @transform_4, window_bounds = array<i64: 1, 8, 512>}]} {
    %c0_i32 = arith.constant 0 : i32
    %0 = arith.cmpi eq, %arg3, %c0_i32 : i32
    %1 = arith.extui %0 : i1 to i32
    %c0_i32_0 = arith.constant 0 : i32
    %2 = arith.cmpi ne, %1, %c0_i32_0 : i32
    scf.if %2 {
      %cst_33 = arith.constant 0xFF800000 : f32
      %56 = vector.broadcast %cst_33 : f32 to vector<8x1xf32>
      %c0_34 = arith.constant 0 : index
      %c0_35 = arith.constant 0 : index
      %57 = vector.load %arg9[%c0_34, %c0_35] : memref<8x1xf32, #tpu.memory_space<vmem>>, vector<8x1xf32>
      tpu.vector_store %arg9[%c0_34, %c0_35], %56 {strides = array<i32>} : memref<8x1xf32, #tpu.memory_space<vmem>>, vector<8x1xf32>,
      %cst_36 = arith.constant 0.000000e+00 : f32
      %58 = vector.broadcast %cst_36 : f32 to vector<8x1xf32>
      %c0_37 = arith.constant 0 : index
      %c0_38 = arith.constant 0 : index
      %59 = vector.load %arg10[%c0_37, %c0_38] : memref<8x1xf32, #tpu.memory_space<vmem>>, vector<8x1xf32>
      tpu.vector_store %arg10[%c0_37, %c0_38], %58 {strides = array<i32>} : memref<8x1xf32, #tpu.memory_space<vmem>>, vector<8x1xf32>,
    } else {
    }
    %c0_i32_1 = arith.constant 0 : i32
    %3 = arith.cmpi eq, %arg2, %c0_i32_1 : i32
    %c0_i32_2 = arith.constant 0 : i32
    %4 = arith.cmpi eq, %arg3, %c0_i32_2 : i32
    %5 = arith.andi %3, %4 : i1
    %6 = arith.extui %5 : i1 to i32
    %c0_i32_3 = arith.constant 0 : i32
    %7 = arith.cmpi ne, %6, %c0_i32_3 : i32
    scf.if %7 {
      %cst_33 = arith.constant 0.000000e+00 : f32
      %56 = vector.broadcast %cst_33 : f32 to vector<8x1xf32>
      %c0_34 = arith.constant 0 : index
      %c0_35 = arith.constant 0 : index
      %57 = vector.load %arg11[%c0_34, %c0_35] : memref<8x1xf32, #tpu.memory_space<vmem>>, vector<8x1xf32>
      tpu.vector_store %arg11[%c0_34, %c0_35], %56 {strides = array<i32>} : memref<8x1xf32, #tpu.memory_space<vmem>>, vector<8x1xf32>,
    } else {
    }
    %c256_i32 = arith.constant 256 : i32
    %8 = arith.muli %arg3, %c256_i32 : i32
    %9 = tpu.assume_multiple %8, 256 : i32
    %c0 = arith.constant 0 : index
    %c0_4 = arith.constant 0 : index
    %c0_5 = arith.constant 0 : index
    %10 = vector.load %arg4[%c0, %c0_4, %c0_5] : memref<1x8x128xbf16, #tpu.memory_space<vmem>>, vector<1x8x128xbf16>
    %11 = vector.shape_cast %10 : vector<1x8x128xbf16> to vector<8x128xbf16>
    %c0_6 = arith.constant 0 : index
    %c0_7 = arith.constant 0 : index
    %c0_8 = arith.constant 0 : index
    %12 = vector.load %arg5[%c0_6, %c0_7, %c0_8] : memref<1x128x256xbf16, #tpu.memory_space<vmem>>, vector<1x128x256xbf16>
    %13 = vector.shape_cast %12 : vector<1x128x256xbf16> to vector<128x256xbf16>
    %c0_9 = arith.constant 0 : index
    %c0_10 = arith.constant 0 : index
    %14 = arith.index_cast %9 : i32 to index
    %15 = vector.load %arg6[%c0_9, %c0_10, %14] : memref<1x1x512xf32, #tpu.memory_space<vmem>>, vector<1x1x256xf32>
    %16 = vector.shape_cast %15 : vector<1x1x256xf32> to vector<1x256xf32>
    %c0_11 = arith.constant 0 : index
    %c0_12 = arith.constant 0 : index
    %17 = arith.index_cast %9 : i32 to index
    %18 = vector.load %arg7[%c0_11, %c0_12, %17] : memref<1x1x512xf32, #tpu.memory_space<vmem>>, vector<1x1x256xf32>
    %19 = vector.shape_cast %18 : vector<1x1x256xf32> to vector<1x256xf32>
    %cst = arith.constant dense<0.000000e+00> : vector<8x256xf32>
    %20 = tpu.matmul %11, %13, %cst {dimension_numbers = #tpu.dot_dimension_numbers<[1], [0], [0], [1], [0, 0, 1, 1], [], []>} : vector<8x128xbf16>, vector<128x256xbf16>, vector<8x256xf32> -> vector<8x256xf32>
    %21 = vector.broadcast %16 : vector<1x256xf32> to vector<8x256xf32>
    %22 = arith.mulf %20, %21 : vector<8x256xf32>
    %23 = vector.broadcast %19 : vector<1x256xf32> to vector<8x256xf32>
    %24 = arith.addf %22, %23 : vector<8x256xf32>
    %cst_13 = arith.constant dense<0xFF800000> : vector<8xf32>
    %25 = vector.multi_reduction <maximumf>, %24, %cst_13 [1] : vector<8x256xf32> to vector<8xf32>
    %26 = vector.shape_cast %25 : vector<8xf32> to vector<8x1xf32>
    %c0_14 = arith.constant 0 : index
    %c0_15 = arith.constant 0 : index
    %27 = vector.load %arg9[%c0_14, %c0_15] : memref<8x1xf32, #tpu.memory_space<vmem>>, vector<8x1xf32>
    %28 = arith.maximumf %27, %26 : vector<8x1xf32>
    %c0_16 = arith.constant 0 : index
    %c0_17 = arith.constant 0 : index
    %29 = vector.load %arg10[%c0_16, %c0_17] : memref<8x1xf32, #tpu.memory_space<vmem>>, vector<8x1xf32>
    %c0_18 = arith.constant 0 : index
    %c0_19 = arith.constant 0 : index
    %30 = vector.load %arg9[%c0_18, %c0_19] : memref<8x1xf32, #tpu.memory_space<vmem>>, vector<8x1xf32>
    %31 = arith.subf %30, %28 : vector<8x1xf32>
    %32 = math.exp %31 : vector<8x1xf32>
    %33 = arith.mulf %29, %32 : vector<8x1xf32>
    %34 = vector.broadcast %28 : vector<8x1xf32> to vector<8x256xf32>
    %35 = arith.subf %24, %34 : vector<8x256xf32>
    %36 = math.exp %35 : vector<8x256xf32>
    %cst_20 = arith.constant dense<0.000000e+00> : vector<8xf32>
    %37 = vector.multi_reduction <add>, %36, %cst_20 [1] : vector<8x256xf32> to vector<8xf32>
    %38 = vector.shape_cast %37 : vector<8xf32> to vector<8x1xf32>
    %39 = arith.addf %33, %38 : vector<8x1xf32>
    %c0_21 = arith.constant 0 : index
    %c0_22 = arith.constant 0 : index
    %40 = vector.load %arg10[%c0_21, %c0_22] : memref<8x1xf32, #tpu.memory_space<vmem>>, vector<8x1xf32>
    tpu.vector_store %arg10[%c0_21, %c0_22], %39 {strides = array<i32>} : memref<8x1xf32, #tpu.memory_space<vmem>>, vector<8x1xf32>,
    %c0_23 = arith.constant 0 : index
    %c0_24 = arith.constant 0 : index
    %41 = vector.load %arg9[%c0_23, %c0_24] : memref<8x1xf32, #tpu.memory_space<vmem>>, vector<8x1xf32>
    tpu.vector_store %arg9[%c0_23, %c0_24], %28 {strides = array<i32>} : memref<8x1xf32, #tpu.memory_space<vmem>>, vector<8x1xf32>,
    %c0_i32_25 = arith.constant 0 : i32
    %42 = arith.cmpi eq, %arg2, %c0_i32_25 : i32
    %43 = arith.extui %42 : i1 to i32
    %c0_i32_26 = arith.constant 0 : i32
    %44 = arith.cmpi ne, %43, %c0_i32_26 : i32
    scf.if %44 {
      %c0_33 = arith.constant 0 : index
      %c0_34 = arith.constant 0 : index
      %56 = arith.index_cast %9 : i32 to index
      %57 = vector.load %arg8[%c0_33, %c0_34, %56] : memref<1x8x512xf32, #tpu.memory_space<vmem>>, vector<1x8x256xf32>
      %58 = vector.shape_cast %57 : vector<1x8x256xf32> to vector<8x256xf32>
      %59 = vector.shape_cast %24 : vector<8x256xf32> to vector<1x8x256xf32>
      tpu.vector_store %arg8[%c0_33, %c0_34, %56], %59 {strides = array<i32>} : memref<1x8x512xf32, #tpu.memory_space<vmem>>, vector<1x8x256xf32>,
    } else {
    }
    %c0_i32_27 = arith.constant 0 : i32
    %45 = arith.cmpi sgt, %arg2, %c0_i32_27 : i32
    %46 = arith.extui %45 : i1 to i32
    %c0_i32_28 = arith.constant 0 : i32
    %47 = arith.cmpi ne, %46, %c0_i32_28 : i32
    scf.if %47 {
      %c0_33 = arith.constant 0 : index
      %c0_34 = arith.constant 0 : index
      %56 = arith.index_cast %9 : i32 to index
      %57 = vector.load %arg8[%c0_33, %c0_34, %56] : memref<1x8x512xf32, #tpu.memory_space<vmem>>, vector<1x8x256xf32>
      %58 = vector.shape_cast %57 : vector<1x8x256xf32> to vector<8x256xf32>
      %59 = arith.addf %58, %24 : vector<8x256xf32>
      %c0_35 = arith.constant 0 : index
      %c0_36 = arith.constant 0 : index
      %60 = arith.index_cast %9 : i32 to index
      %61 = vector.load %arg8[%c0_35, %c0_36, %60] : memref<1x8x512xf32, #tpu.memory_space<vmem>>, vector<1x8x256xf32>
      %62 = vector.shape_cast %61 : vector<1x8x256xf32> to vector<8x256xf32>
      %63 = vector.shape_cast %59 : vector<8x256xf32> to vector<1x8x256xf32>
      tpu.vector_store %arg8[%c0_35, %c0_36, %60], %63 {strides = array<i32>} : memref<1x8x512xf32, #tpu.memory_space<vmem>>, vector<1x8x256xf32>,
    } else {
    }
    %c1_i32 = arith.constant 1 : i32
    %48 = arith.cmpi eq, %arg3, %c1_i32 : i32
    %49 = arith.extui %48 : i1 to i32
    %c0_i32_29 = arith.constant 0 : i32
    %50 = arith.cmpi ne, %49, %c0_i32_29 : i32
    scf.if %50 {
      %c0_33 = arith.constant 0 : index
      %c0_34 = arith.constant 0 : index
      %56 = vector.load %arg11[%c0_33, %c0_34] : memref<8x1xf32, #tpu.memory_space<vmem>>, vector<8x1xf32>
      %c0_35 = arith.constant 0 : index
      %c0_36 = arith.constant 0 : index
      %57 = vector.load %arg9[%c0_35, %c0_36] : memref<8x1xf32, #tpu.memory_space<vmem>>, vector<8x1xf32>
      %c0_37 = arith.constant 0 : index
      %c0_38 = arith.constant 0 : index
      %58 = vector.load %arg10[%c0_37, %c0_38] : memref<8x1xf32, #tpu.memory_space<vmem>>, vector<8x1xf32>
      %59 = math.log %58 : vector<8x1xf32>
      %60 = arith.addf %57, %59 : vector<8x1xf32>
      %61 = arith.addf %56, %60 : vector<8x1xf32>
      %c0_39 = arith.constant 0 : index
      %c0_40 = arith.constant 0 : index
      %62 = vector.load %arg11[%c0_39, %c0_40] : memref<8x1xf32, #tpu.memory_space<vmem>>, vector<8x1xf32>
      tpu.vector_store %arg11[%c0_39, %c0_40], %61 {strides = array<i32>} : memref<8x1xf32, #tpu.memory_space<vmem>>, vector<8x1xf32>,
    } else {
    }
    %c0_i32_30 = arith.constant 0 : i32
    %51 = arith.cmpi eq, %arg2, %c0_i32_30 : i32
    %c1_i32_31 = arith.constant 1 : i32
    %52 = arith.cmpi eq, %arg3, %c1_i32_31 : i32
    %53 = arith.andi %51, %52 : i1
    %54 = arith.extui %53 : i1 to i32
    %c0_i32_32 = arith.constant 0 : i32
    %55 = arith.cmpi ne, %54, %c0_i32_32 : i32
    scf.if %55 {
      %c0_33 = arith.constant 0 : index
      %c0_34 = arith.constant 0 : index
      %c0_35 = arith.constant 0 : index
      %56 = vector.load %arg8[%c0_33, %c0_34, %c0_35] : memref<1x8x512xf32, #tpu.memory_space<vmem>>, vector<1x8x512xf32>
      %57 = vector.shape_cast %56 : vector<1x8x512xf32> to vector<8x512xf32>
      %c0_36 = arith.constant 0 : index
      %c0_37 = arith.constant 0 : index
      %58 = vector.load %arg11[%c0_36, %c0_37] : memref<8x1xf32, #tpu.memory_space<vmem>>, vector<8x1xf32>
      %59 = vector.broadcast %58 : vector<8x1xf32> to vector<8x512xf32>
      %60 = arith.subf %57, %59 : vector<8x512xf32>
      %cst_38 = arith.constant 5.000000e-01 : f32
      %61 = vector.broadcast %cst_38 : f32 to vector<8x512xf32>
      %62 = arith.mulf %60, %61 : vector<8x512xf32>
      %c0_39 = arith.constant 0 : index
      %c0_40 = arith.constant 0 : index
      %c0_41 = arith.constant 0 : index
      %63 = vector.load %arg8[%c0_39, %c0_40, %c0_41] : memref<1x8x512xf32, #tpu.memory_space<vmem>>, vector<1x8x512xf32>
      %64 = vector.shape_cast %63 : vector<1x8x512xf32> to vector<8x512xf32>
      %65 = vector.shape_cast %62 : vector<8x512xf32> to vector<1x8x512xf32>
      tpu.vector_store %arg8[%c0_39, %c0_40, %c0_41], %65 {strides = array<i32>} : memref<1x8x512xf32, #tpu.memory_space<vmem>>, vector<1x8x512xf32>,
    } else {
    }
    return
  }
  func.func @transform_0(%arg0: i32, %arg1: i32, %arg2: i32, %arg3: i32) -> (i32, i32, i32) {
    %c1_i32 = arith.constant 1 : i32
    %0 = arith.muli %arg0, %c1_i32 : i32
    %1 = arith.addi %0, %arg2 : i32
    %c0_i32 = arith.constant 0 : i32
    %c0_i32_0 = arith.constant 0 : i32
    return %1, %arg1, %c0_i32 : i32, i32, i32
  }
  func.func @transform_1(%arg0: i32, %arg1: i32, %arg2: i32, %arg3: i32) -> (i32, i32, i32) {
    %c1_i32 = arith.constant 1 : i32
    %0 = arith.muli %arg0, %c1_i32 : i32
    %1 = arith.addi %0, %arg2 : i32
    %c0_i32 = arith.constant 0 : i32
    %c0_i32_0 = arith.constant 0 : i32
    return %1, %c0_i32, %arg3 : i32, i32, i32
  }
  func.func @transform_2(%arg0: i32, %arg1: i32, %arg2: i32, %arg3: i32) -> (i32, i32, i32) {
    %c1_i32 = arith.constant 1 : i32
    %0 = arith.muli %arg0, %c1_i32 : i32
    %1 = arith.addi %0, %arg2 : i32
    %c0_i32 = arith.constant 0 : i32
    %c0_i32_0 = arith.constant 0 : i32
    %c0_i32_1 = arith.constant 0 : i32
    return %1, %c0_i32, %c0_i32_0 : i32, i32, i32
  }
  func.func @transform_3(%arg0: i32, %arg1: i32, %arg2: i32, %arg3: i32) -> (i32, i32, i32) {
    %c1_i32 = arith.constant 1 : i32
    %0 = arith.muli %arg0, %c1_i32 : i32
    %1 = arith.addi %0, %arg2 : i32
    %c0_i32 = arith.constant 0 : i32
    %c0_i32_0 = arith.constant 0 : i32
    %c0_i32_1 = arith.constant 0 : i32
    return %1, %c0_i32, %c0_i32_0 : i32, i32, i32
  }
  func.func @transform_4(%arg0: i32, %arg1: i32, %arg2: i32, %arg3: i32) -> (i32, i32, i32) {
    %c0_i32 = arith.constant 0 : i32
    %c0_i32_0 = arith.constant 0 : i32
    return %arg0, %arg1, %c0_i32 : i32, i32, i32
  }
}

</mosaic_0001>

<bundles_post_ra>
// kernel: ensemble_generator.1
= control target key start
LH: loop header
LB: loop body
LE: loop exit
PB: predicated region body
PF: predicated region fallthrough
CT: control target
= control target key end

     0   :  { %s1598_s0 = inlined_call_operand.hbm [shape: bf16[2,8,128], index: 0, kind: input, shape index: {}]   ;;  %s1599_s1 = inlined_call_operand.hbm [shape: bf16[2,128,512], index: 1, kind: input, shape index: {}]   ;;  %s1600_s2 = inlined_call_operand.hbm [shape: f32[2,1,512], index: 2, kind: input, shape index: {}]   ;;  %s1601_s3 = inlined_call_operand.vmem [shape: f32[2,1,512], index: 3, kind: input, shape index: {}]   ;;  %s1602_s4 = inlined_call_operand.vmem [shape: f32[2,8,512], index: 4, kind: output, shape index: {}]  }
   0x1   :  { %1610 = sst [smem:[#allocation15_spill]] %s1599_s1 }
   0x2   :  { %1611 = sst [smem:[#allocation16_spill]] %s1601_s3 }
   0x3   :  { %1612 = sst [smem:[#allocation17_spill]] %s1602_s4 }
   0x4   :  { %9 = vsyncpa [#allocation6], 0 }
   0x5   :  { %11 = vsyncpa [#allocation6 + $0x1], 0 }
   0x6   :  { %12 = vsyncpa [#allocation8], 0 }
   0x7   :  { %14 = vsyncpa [#allocation8 + $0x1], 0  ;;  %s1235_s15 = smov 0   ;;  %s1237_s16 = smov 0  }
   0x8   :  { %s1239_s17 = smov 0   ;;  %s1241_s18 = smov 0  }
   0x9   :  { %s1243_s19 = smov 0   ;;  %s1245_s20 = smov 0  }
   0xa   :  { %s1247_s21 = smov 0   ;;  %s1249_s22 = smov 0  }
   0xb   :  { %s1251_s23 = smov 0   ;;  %s1253_s24 = smov 0  }
   0xc   :  { %s1255_s25 = smov 0  }
   0xd LB: > { %s35_s26 = sadd.s32 1, %s1189_s23  ;;  %p1604_p1 = scmp.eq.s32.totalorder %s1197_s25, 0  ;;  %s1197_s25 = sphi %s1255_s25, %s20_s25   ;;  %s1193_s24 = sphi %s1253_s24, %s1646_s24   ;;  %s1189_s23 = sphi %s1251_s23, %s1645_s23   ;;  %s1185_s22 = sphi %s1249_s22, %s1644_s22   ;;  %s1181_s21 = sphi %s1247_s21, %s1643_s21   ;;  %s1177_s20 = sphi %s1245_s20, %s1642_s20   ;;  %s1173_s19 = sphi %s1243_s19, %s1641_s19   ;;  %s1169_s18 = sphi %s1241_s18, %s1640_s18   ;;  %s1165_s17 = sphi %s1239_s17, %s1639_s17   ;;  %s1161_s16 = sphi %s1237_s16, %s1638_s16   ;;  %s1157_s15 = sphi %s1235_s15, %s1637_s15  }
   0xe   : > { %p1292_p0 = scmp.ge.s32.totalorder %s35_s26, 2  ;;  %p94_p2 = scmp.ne.s32.totalorder %s1165_s17, %s1161_s16 }
   0xf   : > { %p1603_p4 = scmp.lt.s32.totalorder %s1197_s25, 4  ;;  %s1314_s6 = sshll.u32 %s1193_s24, 6 }
  0x10   : > { %s1648_s26 = smov (%p1292_p0, %s35_s26), 0  ;;  %p1306_p3 = por %p94_p2, %p1604_p1 }
  0x11   : > { %1614 = sst [smem:[#allocation13_spill]] %s1648_s26  ;;  %s83_s5 = ssub.s32 %s1189_s23, %s1648_s26 }
  0x12   : > { %s228_s7 = sand.u32 1, %s1197_s25   ;;  %s230_s8 = sand.u32 1, %s1165_s17  }
  0x13   : > { %s819_s9 = sshll.u32 %s230_s8, 7  ;;  %s820_s10 = sshll.u32 %s1189_s23, 1 }
  0x14   : > { %s239_s11 = sadd.s32 %s820_s10, %s1314_s6  ;;  %s232_s13 = scalar_lea.vmem [#allocation7], %s819_s9 }
  0x15   : > { %s822_s12 = sshll.u32 %s239_s11, 6  ;;  %s242_s14 = sshll.u32 %s232_s13, 4  ;;  %s1325_s14 = int_to_ptr.vmem [resolvable:$true] %s242_s14 }
  0x16   : > { %s1616_s1 = sld [smem:[#allocation15_spill]]  ;;  %p1331_p5 = pnand %p1603_p4, %p1306_p3 }
  0x17   : > { %s1336_s9 = scalar_lea.sflag [#allocation8], %s228_s7 }
  0x18   : > { %p1011_p8 = pneg %p1331_p5 }
  0x1c   : > { %s1323_s4 = scalar_lea.hbm %s1616_s1, %s822_s12  ;;  %s1014_s10 = scalar_lea.hbm %s1616_s1, 8192 }
  0x1d   : > { %s1009_s27 = scalar_lea.hbm %s1323_s4, 2048  ;;  %p1015_p11 = scmp.lt.u32.totalorder %s1323_s4, %s1616_s1 }
  0x1e   : > { %p1010_p7 = scmp.ne.s32.totalorder %s1323_s4, %s1009_s27  ;;  %p1016_p12 = scmp.lt.u32.totalorder %s1014_s10, %s1009_s27 }
  0x1f   : > { %p1018_p2 = scmp.lt.u32.totalorder %s1009_s27, %s1323_s4 }
  0x20   : > { %p1012_p9 = pnand %p1011_p8, %p1010_p7  ;;  %p1017_p13 = por %p1016_p12, %p1015_p11 }
  0x22   : > { %p1013_p10 = pneg %p1012_p9  ;;  %p1019_p3 = por %p1018_p2, %p1017_p13 }
  0x24   : > { %p1020_p4 = pnand %p1019_p3, %p1013_p10 }
  0x26   : > { %1023 = shalt.err (!%p1020_p4)
}
  0x27   : > { %s1024_s7 = scalar_lea.vmem %s1325_s14, 2048  ;;  %s1199_s13 = smov [#allocation7]  }
  0x28   : > { %p1025_p7 = scmp.ne.s32.totalorder %s1325_s14, %s1024_s7  ;;  %s1029_s29 = sshll.u32 %s1199_s13, 4  ;;  %s1030_s29 = int_to_ptr.vmem [resolvable:$false] %s1029_s29 }
  0x29   : > { %s1031_s30 = scalar_lea.vmem %s1030_s29, 4096  ;;  %p1032_p6 = scmp.lt.s32.totalorder %s1325_s14, %s1030_s29 }
  0x2a   : > { %p1027_p9 = pnand %p1025_p7, %p1011_p8  ;;  %p1033_p11 = scmp.lt.s32.totalorder %s1031_s30, %s1024_s7 }
  0x2c   : > { %p1028_p1 = pneg %p1027_p9  ;;  %p1034_p12 = por %p1033_p11, %p1032_p6 }
  0x2e   : > { %p1035_p13 = pnand %p1034_p12, %p1028_p1 }
  0x30   : > { %1038 = shalt.err (!%p1035_p13)
}
  0x31   : > { %s1200_s27 = smov 256   ;;  %s1201_s10 = smov 128  }
  0x32   : > { %s1202_s11 = smov 8   ;;  %p279_p1 = scmp.lt.s32.totalorder %s1197_s25, 5 }
  0x33   : > { %874 = dma.hbm_to_vmem [thread:$0]  (!%p1331_p5), %s1323_s4, 2048, %s1325_s14, %s1336_s9, %s1200_s27, %s1201_s10, %s1202_s11  }
  0x34   : > { %p1618_p4 = scmp.ge.s32.totalorder %s1197_s25, 1  ;;  %s1605_s7 = sadd.s32 4294967295, %s1197_s25  }
  0x35   : > { %s57_s13 = sadd.s32 1, %s1177_s20  ;;  %s1620_s29 = sadd.s32 1, %s1193_s24 }
  0x36   : > { %p1367_p6 = pnand %p1618_p4, %p279_p1  ;;  %s1650_s29 = smov (!%p1292_p0, %s1620_s29), %s1193_s24 }
  0x37   : > { %p64_p8 = scmp.ne.s32.totalorder %s1177_s20, %s1173_s19  ;;  %p70_p10 = scmp.ne.s32.totalorder %s1173_s19, %s1169_s18 }
  0x38   : > { %s1619_s12 = scalar_select %p1367_p6, 1, 0 }
  0x39   : > { %p48_p5 = scmp.ge.s32.totalorder %s1650_s29, 2  ;;  %p71_p2 = scmp.eq.s32.totalorder %s1605_s7, 0 }
  0x3a   : > { %p1621_p3 = scmp.eq.s32.totalorder %s1197_s25, 0  ;;  %p100_p9 = scmp.ne.s32.totalorder %s1161_s16, %s1157_s15 }
  0x3b   : > { %s1652_s29 = smov (%p48_p5, %s1650_s29), 0  ;;  %p1394_p0 = por %p71_p2, %p70_p10 }
  0x3c   : > { %p1386_p7 = por %p1621_p3, %p64_p8  ;;  %1623 = sst [smem:[#allocation14_spill]] %s1652_s29 }
  0x3d   : > { %s1624_s28 = scalar_select %p1394_p0, 1, 0 }
  0x3e   : > { %p1398_p11 = por %p100_p9, %p71_p2  ;;  %s52_s14 = ssub.s32 %s1193_s24, %s1652_s29 }
  0x3f   : > { %s208_s8 = sand.u32 1, %s1177_s20   ;;  %p55_p12 = scmp.eq.s32.totalorder %s52_s14, 0 }
  0x40   : > { %s1625_s18 = scalar_select %p1398_p11, 1, 0 }
  0x41   : > { %s84_s30 = sor.u32 %s83_s5, %s52_s14  ;;  %s1626_s15 = sadd.s32 1, %s1165_s17 }
  0x42   : > { %p85_p13 = scmp.eq.s32.totalorder %s84_s30, 0  ;;  %s1416_s11 = sshll.u32 %s208_s8, 2 }
  0x43   : > { %s1409_s27 = scalar_select %p55_p12, %s1177_s20, %s57_s13  }
  0x44   : > { %s1414_s10 = scalar_select %p85_p13, %s1165_s17, %s1626_s15  }
  0x45   : > { %s1422_s3 = scalar_lea.hbm %s1598_s0, %s1314_s6  ;;  %p1627_p1 = scmp.lt.s32.totalorder %s1197_s25, 4 }
  0x46   : > { %s212_s13 = scalar_lea.vmem [#allocation5], %s1416_s11  ;;  %s209_s1 = scalar_lea.sflag [#allocation6], %s208_s8 }
  0x47   : > { %p1428_p4 = pnand %p1627_p1, %p1386_p7  ;;  %s221_s14 = sshll.u32 %s212_s13, 4  ;;  %s1433_s14 = int_to_ptr.vmem [resolvable:$true] %s221_s14 }
  0x48   : > { %s1039_s7 = scalar_lea.hbm %s1422_s3, 64  ;;  %s1044_s15 = scalar_lea.hbm %s1598_s0, 128 }
  0x49   : > { %p1040_p8 = scmp.ne.s32.totalorder %s1422_s3, %s1039_s7  ;;  %p1041_p10 = pneg %p1428_p4 }
  0x4a   : > { %p1045_p3 = scmp.lt.u32.totalorder %s1422_s3, %s1598_s0  ;;  %p1046_p7 = scmp.lt.u32.totalorder %s1044_s15, %s1039_s7 }
  0x4b   : > { %p1042_p5 = pnand %p1041_p10, %p1040_p8  ;;  %p1048_p12 = scmp.lt.u32.totalorder %s1039_s7, %s1422_s3 }
  0x4c   : > { %p1047_p9 = por %p1046_p7, %p1045_p3 }
  0x4d   : > { %p1043_p2 = pneg %p1042_p5 }
  0x4e   : > { %p1049_p13 = por %p1048_p12, %p1047_p9 }
  0x50   : > { %p1050_p1 = pnand %p1049_p13, %p1043_p2 }
  0x52   : > { %1053 = shalt.err (!%p1050_p1)
}
  0x53   : > { %s1054_s8 = scalar_lea.vmem %s1433_s14, 64  ;;  %s1203_s13 = smov [#allocation5]  }
  0x54   : > { %p1055_p8 = scmp.ne.s32.totalorder %s1433_s14, %s1054_s8  ;;  %s1059_s4 = sshll.u32 %s1203_s13, 4  ;;  %s1060_s4 = int_to_ptr.vmem [resolvable:$false] %s1059_s4 }
  0x55   : > { %s1061_s26 = scalar_lea.vmem %s1060_s4, 128  ;;  %p1062_p0 = scmp.lt.s32.totalorder %s1433_s14, %s1060_s4 }
  0x56   : > { %p1057_p5 = pnand %p1055_p8, %p1041_p10  ;;  %p1063_p3 = scmp.lt.s32.totalorder %s1061_s26, %s1054_s8 }
  0x58   : > { %p1058_p11 = pneg %p1057_p5  ;;  %p1064_p7 = por %p1063_p3, %p1062_p0 }
  0x5a   : > { %p1065_p9 = pnand %p1064_p7, %p1058_p11 }
  0x5c   : > { %1068 = shalt.err (!%p1065_p9)
}
  0x5d   : > { %871 = dma.hbm_to_vmem [thread:$0]  (!%p1428_p4), %s1422_s3, 64, %s1433_s14, %s209_s1  }
  0x5e   : > { %s1464_s30 = scalar_lea.hbm %s1600_s2, %s1314_s6  ;;  %s256_s15 = scalar_lea.vmem [#allocation9], %s1416_s11 }
  0x5f   : > { %s265_s8 = sshll.u32 %s256_s15, 4  ;;  %s1069_s13 = scalar_lea.hbm %s1464_s30, 64  ;;  %s266_s8 = int_to_ptr.vmem [resolvable:$true] %s265_s8 }
  0x60   : > { %p1070_p0 = scmp.ne.s32.totalorder %s1464_s30, %s1069_s13  ;;  %s1074_s14 = scalar_lea.hbm %s1600_s2, 128 }
  0x61   : > { %p1075_p12 = scmp.lt.u32.totalorder %s1464_s30, %s1600_s2  ;;  %p1076_p13 = scmp.lt.u32.totalorder %s1074_s14, %s1069_s13 }
  0x62   : > { %p1072_p11 = pnand %p1070_p0, %p1041_p10  ;;  %p1078_p8 = scmp.lt.u32.totalorder %s1069_s13, %s1464_s30 }
  0x63   : > { %p1077_p1 = por %p1076_p13, %p1075_p12 }
  0x64   : > { %p1073_p2 = pneg %p1072_p11 }
  0x65   : > { %p1079_p5 = por %p1078_p8, %p1077_p1 }
  0x67   : > { %p1080_p3 = pnand %p1079_p5, %p1073_p2 }
  0x69   : > { %1083 = shalt.err (!%p1080_p3)
}
  0x6a   : > { %s1084_s11 = scalar_lea.vmem %s266_s8, 64  ;;  %s1204_s26 = smov [#allocation9]  }
  0x6b   : > { %p1085_p7 = scmp.ne.s32.totalorder %s266_s8, %s1084_s11  ;;  %s1089_s29 = sshll.u32 %s1204_s26, 4  ;;  %s1090_s29 = int_to_ptr.vmem [resolvable:$false] %s1089_s29 }
  0x6c   : > { %s1091_s7 = scalar_lea.vmem %s1090_s29, 128  ;;  %p1092_p11 = scmp.lt.s32.totalorder %s266_s8, %s1090_s29 }
  0x6d   : > { %p1087_p9 = pnand %p1085_p7, %p1041_p10  ;;  %p1093_p6 = scmp.lt.s32.totalorder %s1091_s7, %s1084_s11 }
  0x6f   : > { %p1088_p0 = pneg %p1087_p9  ;;  %p1094_p12 = por %p1093_p6, %p1092_p11 }
  0x71   : > { %p1095_p13 = pnand %p1094_p12, %p1088_p0 }
  0x73   : > { %1098 = shalt.err (!%p1095_p13)
}
  0x74   : > { %877 = dma.hbm_to_vmem [thread:$0]  (!%p1428_p4), %s1464_s30, 64, %s266_s8, %s1336_s9  }
  0x75   : > { %p1629_p2 = scmp.ne.s32.totalorder %s1619_s12, 0 }
  0x76   : > { %s285_s15 = sand.u32 (!%p1629_p2), 1, %s1173_s19   ;;  %p1630_p10 = scmp.ne.s32.totalorder (!%p1629_p2), %s1624_s28, 0 }
  0x77   : > { %283 = sbr.rel (%p1629_p2) target bundleno = 1007 (0x3ef), region = 36  ;;  %s1490_s13 = sshll.u32 (!%p1629_p2), %s285_s15, 2 }
  0x78   : > { %s286_s4 = scalar_lea.sflag (!%p1629_p2), [#allocation6], %s285_s15  ;;  %s289_s3 = scalar_lea.vmem (!%p1629_p2), [#allocation5], %s1490_s13 }
  0x7e   : > { %1144 = dma.done.wait (%p1630_p10), %s286_s4, 64  }
  0x7f   : > { %1146 = vsyncadd (%p1630_p10), %s286_s4, 4294967232  ;;  %s1631_s5 = sadd.s32 4294967295, %s1197_s25   ;;  %s296_s12 = sand.u32 1, %s1161_s16  }
  0x80   : > { %s294_s9 = sand.u32 1, %s1631_s5   ;;  %s828_s30 = sshll.u32 %s296_s12, 7 }
  0x81   : > { %s295_s8 = scalar_lea.sflag [#allocation8], %s294_s9  ;;  %s1500_s14 = scalar_lea.vmem [#allocation7], %s828_s30 }
  0x82   : > { %p1632_p6 = scmp.ne.s32.totalorder %s1625_s18, 0 }
  0x84   : > { %1148 = dma.done.wait (%p1632_p6), %s295_s8, 2048  }
  0x85   : > { %1150 = vsyncadd (%p1632_p6), %s295_s8, 4294965248  ;;  %s307_s1 = scalar_lea.vmem [#allocation9], %s1490_s13 }
  0x86   : > { %1152 = dma.done.wait (%p1630_p10), %s295_s8, 64  }
  0x87   : > { %1154 = vsyncadd (%p1630_p10), %s295_s8, 4294967232  ;;  %p356_p4 = scmp.lt.s32.totalorder %s1185_s22, 1  ;;  %p371_p1 = scmp.eq.s32.totalorder %s1181_s21, 0 }
  0x88   : > { %s1633_s18 = sld [smem:[#allocation16_spill]]  ;;  %s1634_s5 = sld [smem:[#allocation17_spill]] }
  0x89   : > { %s1654_s22 = smov (!%p356_p4, %s1185_s22), 1  ;;  %p833_p8 = scmp.ne.s32.totalorder %s1181_s21, 0 }
  0x8a   : > { %s830_s6 = sshll.u32 %s1654_s22, 2  ;;  %s859_s11 = sshll.u32 %s1654_s22, 5  ;;  %vm375_vm0 = vcmask (!%p833_p8), 7168   ;;  %v1205_v0 = vmov (!%p833_p8), -inf   ;;  %v1206_v1 = vmov (!%p833_p8), 0.0  }
  0x8b   : > { %374 = sbr.rel (%p833_p8) target bundleno = 146 (0x92), region = 52  ;;  %376 = vst.msk [vmem:[#allocation2] sm:$0xff] (!%p833_p8), %vm375_vm0, %v1205_v0  ;;  %377 = vst.msk [vmem:[#allocation3] sm:$0xff] (!%p833_p8), %vm375_vm0, %v1206_v1 }
  0x8e   : > { %s1517_s7 = scalar_lea.vmem %s1633_s18, %s830_s6  ;;  %s1522_s9 = scalar_lea.vmem %s1634_s5, %s859_s11 }
  0x92 PF: > { %382 = sbr.rel (!%p371_p1) target bundleno = 153 (0x99), region = 56  ;;  %vm383_vm1 = vcmask (%p371_p1), 7168   ;;  %v1207_v2 = vmov (%p371_p1), 0.0  }
  0x93   : > { %384 = vst.msk [vmem:[#allocation4] sm:$0xff] (%p371_p1), %vm383_vm1, %v1207_v2 }
  0x99 PF: > { %v976_v3 = vld [vmem:[%s1500_s14 + $0x4] ss:$8 sps:$4 sm:$0xff]   ;;  %v978_v4 = vld [vmem:[%s1500_s14] ss:$8 sps:$4 sm:$0xff]   ;;  %v1208_v5 = vmov 0   ;;  %s835_s22 = sshll.u32 %s1181_s21, 8  ;;  %v531_v21 = vlaneseq }
  0x9a   : > { %521 = vmatprep.mubr.bf16.mxu0 %v1208_v5  ;;  %975 = vset.pattern.permute.xlu0 %v1208_v5  ;;  %v979_v6 = vld [vmem:[%s1500_s14 + $0x14] ss:$8 sps:$4 sm:$0xff]   ;;  %v981_v7 = vld [vmem:[%s1500_s14 + $0x10] ss:$8 sps:$4 sm:$0xff]   ;;  %v982_v8 = vld [vmem:[%s1500_s14 + $0x24] ss:$8 sps:$4 sm:$0xff]  }
  0x9b   : > { %489 = vmatprep.subr.bf16.mxu0 %v976_v3  ;;  %v984_v9 = vld [vmem:[%s1500_s14 + $0x20] ss:$8 sps:$4 sm:$0xff]   ;;  %v985_v10 = vld [vmem:[%s1500_s14 + $0x34] ss:$8 sps:$4 sm:$0xff]   ;;  %v987_v11 = vld [vmem:[%s1500_s14 + $0x30] ss:$8 sps:$4 sm:$0xff]  }
  0x9c   : > { %490 = vmatpush1.bf16.msra.mxu0 %v978_v4  ;;  %v988_v12 = vld [vmem:[%s1500_s14 + $0x44] ss:$8 sps:$4 sm:$0xff]   ;;  %v990_v13 = vld [vmem:[%s1500_s14 + $0x40] ss:$8 sps:$4 sm:$0xff]   ;;  %v991_v14 = vld [vmem:[%s1500_s14 + $0x54] ss:$8 sps:$4 sm:$0xff]  }
  0x9d   : > { %491 = vmatprep.subr.bf16.mxu0 %v979_v6  ;;  %v993_v15 = vld [vmem:[%s1500_s14 + $0x50] ss:$8 sps:$4 sm:$0xff]   ;;  %v994_v16 = vld [vmem:[%s1500_s14 + $0x64] ss:$8 sps:$4 sm:$0xff]   ;;  %v996_v17 = vld [vmem:[%s1500_s14 + $0x60] ss:$8 sps:$4 sm:$0xff]  }
  0x9e   : > { %v997_v18 = vld [vmem:[%s1500_s14 + $0x74] ss:$8 sps:$4 sm:$0xff]   ;;  %v999_v19 = vld [vmem:[%s1500_s14 + $0x70] ss:$8 sps:$4 sm:$0xff]   ;;  %s403_s28 = sshra.s32 %s835_s22, 7  ;;  %v532_v22 = vshrl.u32 %v531_v21, 7 }
  0x9f   : > { %v386_v20 = vld [vmem:[%s289_s3] sm:$0xf]  ;;  %s405_s12 = scalar_lea.vmem %s307_s1, %s403_s28 [#allocation9]  ;;  %s407_s30 = scalar_lea.vmem %s1517_s7, %s403_s28  ;;  %v559_v40 = vld [vmem:[#allocation2] sm:$0xff]  ;;  %vm581_vm2 = vcmask 7168   ;;  %v561_v54 = vld [vmem:[#allocation3] sm:$0xff] }
  0xa0   : > { %492 = vmatpush1.bf16.msra.mxu0 %v981_v7  ;;  %v533_v23 = vsub.s32 0, %v532_v22  ;;  %v406_v24 = vld [vmem:[%s405_s12] sm:$0x3]  ;;  %v537_v25 = vsub.s32 1, %v532_v22  ;;  %s852_s8 = sshll.u32 %s403_s28, 3  ;;  %p603_p5 = scmp.eq.s32.totalorder %s1181_s21, 1 }
  0xa1   : > { %493 = vmatprep.subr.bf16.mxu0 %v982_v8  ;;  %v408_v26 = vld [vmem:[%s407_s30] sm:$0x3]  ;;  %s588_s3 = scalar_lea.vmem %s1522_s9, %s852_s8  ;;  %p854_p3 = scmp.ne.s32.totalorder %s1181_s21, 1 }
  0xa2   : > { %v534_v27 = vrot.slane %v406_v24, %v533_v23  ;;  %v538_v28 = vrot.slane %v406_v24, %v537_v25  ;;  %v547_v29 = vrot.slane %v408_v26, %v533_v23  ;;  %v551_v31 = vrot.slane %v408_v26, %v537_v25  ;;  %v607_v62 = vld [vmem:[#allocation4] sm:$0xff] (!%p854_p3) }
  0xa4   : > { %494 = vmatpush1.bf16.msra.mxu0 %v984_v9 }
  0xa5   : > { %495 = vmatprep.subr.bf16.mxu0 %v985_v10 }
  0xa8   : > { %496 = vmatpush1.bf16.msra.mxu0 %v987_v11 }
  0xa9   : > { %497 = vmatprep.subr.bf16.mxu0 %v988_v12 }
  0xac   : > { %498 = vmatpush1.bf16.msra.mxu0 %v990_v13 }
  0xad   : > { %499 = vmatprep.subr.bf16.mxu0 %v991_v14 }
  0xb0   : > { %500 = vmatpush1.bf16.msra.mxu0 %v993_v15 }
  0xb1   : > { %501 = vmatprep.subr.bf16.mxu0 %v994_v16 }
  0xb4   : > { %502 = vmatpush1.bf16.msra.mxu0 %v996_v17 }
  0xb5   : > { %503 = vmatprep.subr.bf16.mxu0 %v997_v18 }
  0xb8   : > { %504 = vmatpush1.bf16.msra.mxu0 %v999_v19 }
  0xbb   : > { %522 = vmatmul.mubr.bf16.vlgmr.msra.gmra.mrb[0].mxu0 %v386_v20 }
 0x18e   : > { %v523_v30 = vpop.f32.mrb[0].mxu0 }
 0x18f   : > { %v541_v32 = vmul.f32 %v534_v27, %v523_v30  ;;  %v525_v33 = vpop.f32.mrb[1].mxu0 }
 0x190   : > { %v542_v34 = vmul.f32 %v538_v28, %v525_v33  ;;  %v527_v35 = vpop.f32.mrb[2].mxu0 }
 0x191   : > { %v554_v36 = vadd.f32 %v547_v29, %v541_v32  ;;  %v528_v37 = vpop.f32.mrb[3].mxu0 }
 0x192   : > { %v555_v38 = vadd.f32 %v551_v31, %v542_v34 }
 0x193   : > { %589 = vst [vmem:[%s588_s3] sm:$0xff] %v554_v36 }
 0x194   : > { %590 = vst [vmem:[%s588_s3 + $0x8] sm:$0xff] %v555_v38  ;;  %v556_v39 = vmax.f32 %v554_v36, %v555_v38 }
 0x196   : > { %557 = vmax.xlane.f32.xlu0 %v556_v39 }
 0x223   : > { %v558_v41 = vpop.xlane.xlu0 %557 }
 0x224   : > { %v560_v42 = vmax.f32 %v559_v40, %v558_v41 }
 0x226   : > { %v562_v43 = vsub.f32 %v559_v40, %v560_v42  ;;  %583 = vst.msk [vmem:[#allocation2] sm:$0xff] %vm581_vm2, %v560_v42  ;;  %568 = vperm.xlu0 %975, %v560_v42  }
 0x228   : > { %v563_v52 = vmul.f32 1.442695, %v562_v43 }
 0x22d   : > { %v608_v60 = vld [vmem:[#allocation2] sm:$0xff] (!%p854_p3) }
 0x2a5   : > { %v569_v44 = vpop.permute.xlu0 %568 }
 0x2a6   : > { %v571_v45 = vsub.f32 %v554_v36, %v569_v44  ;;  %v572_v46 = vsub.f32 %v555_v38, %v569_v44 }
 0x2a8   : > { %v573_v47 = vmul.f32 1.442695, %v571_v45  ;;  %v575_v48 = vmul.f32 1.442695, %v572_v46 }
 0x2aa   : > { %1000 = vpow2.f32 %v573_v47 }
 0x2ab   : > { %1002 = vpow2.f32 %v575_v48 }
 0x2ac   : > { %1004 = vpow2.f32 %v563_v52 }
 0x2b4   : > { %v1001_v49 = vpop.eup %1000 }
 0x2b5   : > { %v1003_v50 = vpop.eup %1002 }
 0x2b6   : > { %v577_v51 = vadd.f32 %v1003_v50, %v1001_v49  ;;  %v1005_v53 = vpop.eup %1004 }
 0x2b7   : > { %v565_v55 = vmul.f32 %v1005_v53, %v561_v54 }
 0x2b8   : > { %578 = vadd.xlane.f32.xlu1 %v577_v51 }
 0x342   : > { %606 = sbr.rel (%p854_p3) target bundleno = 866 (0x362), region = 68 }
 0x345   : > { %v579_v56 = vpop.xlane.xlu1 %578 }
 0x346   : > { %v580_v57 = vadd.f32 %v579_v56, %v565_v55 }
 0x348   : > { %582 = vst.msk [vmem:[#allocation3] sm:$0xff] %vm581_vm2, %v580_v57 }
 0x34f   : > { %v609_v58 = vld [vmem:[#allocation3] sm:$0xff] }
 0x350   : > { %1006 = vlog2.f32 %v609_v58 }
 0x35a   : > { %v1007_v59 = vpop.eup %1006 }
 0x35b   : > { %v611_v61 = vmul.f32 0.6931472, %v1007_v59 }
 0x35d   : > { %v612_v63 = vadd.f32 %v611_v61, %v608_v60 }
 0x35f   : > { %v613_v0 = vadd.f32 %v612_v63, %v607_v62 }
 0x361   : > { %614 = vst.msk [vmem:[#allocation4] sm:$0xff] %vm581_vm2, %v613_v0 }
 0x362 PF: > { %618 = sbr.rel (!%p603_p5) target bundleno = 1007 (0x3ef), region = 72  ;;  %v1209_v2 = vmov (%p603_p5), 0   ;;  %v619_v3 = vld [vmem:[%s1522_s9] sm:$0xff] (%p603_p5)  ;;  %v620_v4 = vld [vmem:[%s1522_s9 + $0x8] sm:$0xff] (%p603_p5)  ;;  %v621_v5 = vld [vmem:[%s1522_s9 + $0x10] sm:$0xff] (%p603_p5) }
 0x363   : > { %1008 = vset.pattern.permute.xlu0 (%p603_p5), %v1209_v2  ;;  %v622_v6 = vld [vmem:[%s1522_s9 + $0x18] sm:$0xff] (%p603_p5) }
 0x368   : > { %v623_v1 = vld [vmem:[#allocation4] sm:$0xff] (%p603_p5) }
 0x369   : > { %626 = vperm.xlu0 %1008, %v623_v1  }
 0x3e8   : > { %v627_v7 = vpop.permute.xlu0 %626 }
 0x3e9   : > { %v629_v8 = vsub.f32 %v619_v3, %v627_v7  ;;  %v630_v9 = vsub.f32 %v620_v4, %v627_v7  ;;  %v631_v10 = vsub.f32 %v621_v5, %v627_v7  ;;  %v632_v11 = vsub.f32 %v622_v6, %v627_v7 }
 0x3eb   : > { %v633_v12 = vmul.f32 0.5, %v629_v8  ;;  %v634_v13 = vmul.f32 0.5, %v630_v9  ;;  %v635_v14 = vmul.f32 0.5, %v631_v10  ;;  %v636_v15 = vmul.f32 0.5, %v632_v11 }
 0x3ed   : > { %637 = vst [vmem:[%s1522_s9] sm:$0xff] %v633_v12  ;;  %638 = vst [vmem:[%s1522_s9 + $0x8] sm:$0xff] %v634_v13 }
 0x3ee   : > { %639 = vst [vmem:[%s1522_s9 + $0x10] sm:$0xff] %v635_v14  ;;  %640 = vst [vmem:[%s1522_s9 + $0x18] sm:$0xff] %v636_v15 }
 0x3ef PF: > { %s20_s25 = sadd.s32 1, %s1197_s25   ;;  %s1635_s13 = sld [smem:[#allocation13_spill]] }
 0x3f0   : > { %p17_p7 = scmp.ge.s32.totalorder %s20_s25, 6   ;;  %s1636_s14 = sld [smem:[#allocation14_spill]] }
 0x3f1   : > { %s1637_s15 = smov %s1161_s16  ;;  %s1638_s16 = smov %s1165_s17 }
 0x3f2   : > { %s1639_s17 = smov %s1414_s10  ;;  %s1640_s18 = smov %s1173_s19 }
 0x3f3   : > { %s1641_s19 = smov %s1177_s20  ;;  %s1642_s20 = smov %s1409_s27 }
 0x3f4   : > { %s1643_s21 = smov %s1189_s23  ;;  %s1644_s22 = smov %s1193_s24 }
 0x3f5   : > { %s1645_s23 = smov %s1635_s13  ;;  %19 = sbr.rel (!%p17_p7) target bundleno = 13 (0xd), region = 131 }
 0x3f6   : > { %s1646_s24 = smov %s1636_s14 }
 0x3fc   :  { %670 = vsyncpa [#allocation6], 1 }
 0x3fd   :  { %672 = vsyncpa [#allocation6 + $0x1], 1 }
 0x3fe   :  { %673 = vsyncpa [#allocation8], 1 }
 0x3ff   :  { %675 = vsyncpa [#allocation8 + $0x1], 1 }

</bundles_post_ra>
